<compile_context>
chip_gen: v6e
topology: v6e:2x2x1
jax: 0.10.0
libtpu: 0.0.40
codegen_flags: <defaults>
</compile_context>

<pallas_src>
import functools

import numpy as np
import jax
import jax.numpy as jnp
from jax.experimental import pallas as pl
from jax.experimental.pallas import tpu as pltpu


def _round_up(v, m):
    return -(-v // m) * m


def _dft_block_matrices(h, w, h_pad, dtype=jnp.bfloat16):
    """Ortho DFT matrices, real/imag fused into block matrices.

    Returns:
      bcat: (w, 2w)        = [Br | Bi]
      acat: (2*h_pad, 2h)  = [[Ar, Ai], [-Ai, Ar]] with zero rows at padded
                             positions (padded rows of S are zero, so exact).
    Both Ar/Ai/Br/Bi are symmetric, so no transposed copies are needed.
    """
    uu = np.arange(h)
    ang_h = -2.0 * np.pi * np.outer(uu, uu) / h
    ar = np.cos(ang_h) / np.sqrt(h)
    ai = np.sin(ang_h) / np.sqrt(h)

    vv = np.arange(w)
    ang_w = -2.0 * np.pi * np.outer(vv, vv) / w
    br = np.cos(ang_w) / np.sqrt(w)
    bi = np.sin(ang_w) / np.sqrt(w)

    bcat = np.concatenate([br, bi], axis=1)                      # (w, 2w)

    acat = np.zeros((2 * h_pad, 2 * h), dtype=np.float64)
    acat[0:h, 0:h] = ar
    acat[0:h, h:2 * h] = ai
    acat[h_pad:h_pad + h, 0:h] = -ai
    acat[h_pad:h_pad + h, h:2 * h] = ar

    return jnp.asarray(bcat, dtype), jnp.asarray(acat, dtype)


def _ffl_kernel(alpha, scale, b, h, w, h_pad, w_pad,
                bcat_ref, acat_ref, x_ref, y_ref, out_ref):
    f32 = jnp.float32
    cdtype = bcat_ref.dtype                                      # bf16 MXU operands

    # Difference in f32 (avoid bf16 cancellation), cast to bf16 only for the MXU.
    d = x_ref[...].astype(f32) - y_ref[...].astype(f32)          # (b, h, w)
    if h_pad > h:  # zero rows -> zero rows of S; acat zero rows make this exact
        d = jnp.concatenate([d, jnp.zeros((b, h_pad - h, w), f32)], axis=1)

    # ---- stage 1: right transform, real/imag fused ----
    #   [Sr | Si] = D2 @ [Br | Bi], one sublane-dense (b*h_pad, w) @ (w, 2w).
    dm = d.reshape(b * h_pad, w).astype(cdtype)
    s = jnp.dot(dm, bcat_ref[...], preferred_element_type=f32)   # (b*h_pad, 2w)
    s = s.reshape(b, h_pad, 2 * w)

    # ---- stage 2: left transform on the per-image transpose ----
    #   [Fre^T | Fim^T] = [Sr^T | Si^T] @ [[Ar, Ai], [-Ai, Ar]]
    # (loss is invariant under per-image transpose -> no back-transpose needed)
    srt = jnp.transpose(s[:, :, :w], (0, 2, 1))                  # (b, w, h_pad)
    sit = jnp.transpose(s[:, :, w:], (0, 2, 1))                  # (b, w, h_pad)
    st = jnp.concatenate([srt, sit], axis=-1)                    # (b, w, 2*h_pad)
    if w_pad > w:  # zero rows -> zero spectrum rows -> contribute 0 to sum/max
        st = jnp.concatenate(
            [st, jnp.zeros((b, w_pad - w, 2 * h_pad), f32)], axis=1)
    stm = st.reshape(b * w_pad, 2 * h_pad).astype(cdtype)
    ft = jnp.dot(stm, acat_ref[...], preferred_element_type=f32)  # (b*w_pad, 2h)
    ft = ft.reshape(b, w_pad, 2 * h)

    fre = ft[:, :, :h]
    fim = ft[:, :, h:]
    freq = fre * fre + fim * fim                                  # (b, w_pad, h)

    # Focal weight: w = sqrt(freq)^alpha / max over (H, W); 0/0 -> 0; clip [0,1].
    wgt = jnp.sqrt(freq)
    if alpha != 1.0:
        wgt = wgt ** alpha
    max_w = jnp.max(wgt, axis=(1, 2), keepdims=True)              # (b, 1, 1)
    inv = jnp.where(max_w > 0.0, 1.0 / jnp.maximum(max_w, 1e-30), 0.0)

    # scale = loss_weight / (NC*H*W); padded rows have freq == 0 -> contribute 0.
    partial = jnp.sum(jnp.clip(wgt * inv, 0.0, 1.0) * freq) * scale
    out_ref[...] = jnp.full((1, 8, 128), partial, dtype=jnp.float32)


def focal_frequency_loss(x, y, loss_weight=1.0, alpha=1.0, block_images=None):
    """x, y: NCHW float arrays. Returns the scalar FFL loss (float32)."""
    n, c, h, w = x.shape
    nc = n * c
    if not jnp.issubdtype(x.dtype, jnp.floating):
        x = x.astype(jnp.float32)
    if not jnp.issubdtype(y.dtype, jnp.floating):
        y = y.astype(jnp.float32)
    # Free reshape; streamed in native dtype (upcast happens inside the kernel).
    xf = x.reshape(nc, h, w)
    yf = y.reshape(nc, h, w)

    h_pad = _round_up(h, 8)
    w_pad = _round_up(w, 8)

    # ---- generation-aware block sizing ----
    try:
        info = pltpu.get_tpu_info()
        vmem_cap = int(getattr(info, "vmem_capacity_bytes", 64 * 1024 * 1024))
    except Exception:
        vmem_cap = 64 * 1024 * 1024            # assume smallest (v7x-like) VMEM
    if vmem_cap >= 100 * 1024 * 1024:          # v5e / v6e: 128 MiB VMEM
        per_block_f32 = 4 * 1024 * 1024        # per-input block budget (f32-equiv)
        vmem_limit = 96 * 1024 * 1024
    else:                                      # v7x: 64 MiB VMEM per TensorCore
        per_block_f32 = 3 * 1024 * 1024 // 2
        vmem_limit = 48 * 1024 * 1024

    img_f32_bytes = h_pad * w_pad * 4
    cap_bytes = max(1, per_block_f32 // img_f32_bytes)
    cap_grid = max(1, -(-nc // 8))             # aim for >= 8 grid steps
    if block_images is not None:
        b_cap = max(1, min(int(block_images), nc))
    else:
        b_cap = max(1, min(cap_bytes, cap_grid, nc))
    # Largest divisor of nc <= b_cap: exact tiling, no padding / tail masking.
    b = 1
    for cand in range(b_cap, 0, -1):
        if nc % cand == 0:
            b = cand
            break
    g = nc // b

    bcat, acat = _dft_block_matrices(h, w, h_pad, jnp.bfloat16)
    scale = float(loss_weight) / float(nc * h * w)

    kernel = functools.partial(_ffl_kernel, float(alpha), scale,
                               b, h, w, h_pad, w_pad)

    def _img_spec(buffered):
        idx = lambda i: (i, 0, 0)
        if buffered:
            return pl.BlockSpec((b, h, w), idx, pipeline_mode=pl.Buffered(3))
        return pl.BlockSpec((b, h, w), idx)

    def _run(buffered):
        return pl.pallas_call(
            kernel,
            out_shape=jax.ShapeDtypeStruct((g, 8, 128), jnp.float32),
            grid_spec=pltpu.PrefetchScalarGridSpec(
                num_scalar_prefetch=0,
                grid=(g,),
                in_specs=[
                    pl.BlockSpec((w, 2 * w), lambda i: (0, 0)),           # [Br|Bi]
                    pl.BlockSpec((2 * h_pad, 2 * h), lambda i: (0, 0)),   # [[Ar,Ai],[-Ai,Ar]]
                    _img_spec(buffered),                                  # x images
                    _img_spec(buffered),                                  # y images
                ],
                out_specs=pl.BlockSpec((1, 8, 128), lambda i: (i, 0, 0)),
            ),
            compiler_params=pltpu.CompilerParams(
                dimension_semantics=("parallel",),   # per-block partials -> megacore OK
                vmem_limit_bytes=vmem_limit,
            ),
        )(bcat, acat, xf, yf)

    try:
        partials = _run(True)
    except Exception:
        # Fallback if pipeline_mode=pl.Buffered isn't supported by this JAX build.
        partials = _run(False)

    # Tiny final reduction of per-block partial sums.
    return jnp.sum(partials[:, 0, 0])


def _ffl_reference(x, y, loss_weight=1.0, alpha=1.0):
    # Pure-JAX reference mirroring the PyTorch FFL (patch_factor=1 defaults).
    xf = jnp.fft.fft2(x.astype(jnp.float32), norm='ortho')
    yf = jnp.fft.fft2(y.astype(jnp.float32), norm='ortho')
    d = xf - yf
    freq_dist = jnp.real(d) ** 2 + jnp.imag(d) ** 2
    w = jnp.sqrt(freq_dist) ** alpha
    w = w / jnp.max(w, axis=(-2, -1), keepdims=True)
    w = jnp.where(jnp.isnan(w), 0.0, w)
    w = jnp.clip(w, 0.0, 1.0)
    return jnp.mean(w * freq_dist) * loss_weight


if __name__ == "__main__":
    key = jax.random.PRNGKey(0)
    kx, ky = jax.random.split(key)
    N, C, H, W = 2, 4, 16, 16
    x = jax.random.normal(kx, (N, C, H, W), dtype=jnp.float32)
    y = jax.random.normal(ky, (N, C, H, W), dtype=jnp.float32)

    loss = focal_frequency_loss(x, y, loss_weight=1.0, alpha=1.0)
    loss = jax.block_until_ready(loss)

    ref = jax.block_until_ready(_ffl_reference(x, y, loss_weight=1.0, alpha=1.0))
    # bf16 MXU operands with f32 accumulation -> ~1% level agreement with the
    # f32 FFT reference is expected.
    np.testing.assert_allclose(np.asarray(loss), np.asarray(ref),
                               rtol=2e-2, atol=1e-3)

    print("KERNEL_OK")
</pallas_src>

<mosaic_0001>
module attributes {stable_mosaic.version = 11 : i64} {
  func.func @_ffl_kernel(%arg0: i32, %arg1: memref<16x32xbf16, #tpu.memory_space<vmem>>, %arg2: memref<32x32xbf16, #tpu.memory_space<vmem>>, %arg3: memref<1x16x16xf32, #tpu.memory_space<vmem>>, %arg4: memref<1x16x16xf32, #tpu.memory_space<vmem>>, %arg5: memref<1x8x128xf32, #tpu.memory_space<vmem>>) attributes {dimension_semantics = [#tpu.dimension_semantics<parallel>], iteration_bounds = array<i64: 8>, scalar_prefetch = 0 : i64, scratch_operands = 0 : i64, tpu.core_type = #tpu.core_type<tc>, window_params = [{pipeline_mode = #tpu.pipeline_mode<synchronous>, transform_indices = @transform_0, window_bounds = array<i64: 16, 32>}, {pipeline_mode = #tpu.pipeline_mode<synchronous>, transform_indices = @transform_1, window_bounds = array<i64: 32, 32>}, {transform_indices = @transform_2, window_bounds = array<i64: 1, 16, 16>}, {transform_indices = @transform_3, window_bounds = array<i64: 1, 16, 16>}, {transform_indices = @transform_4, window_bounds = array<i64: 1, 8, 128>}]} {
    %c0 = arith.constant 0 : index
    %c0_0 = arith.constant 0 : index
    %c0_1 = arith.constant 0 : index
    %0 = vector.load %arg3[%c0, %c0_0, %c0_1] : memref<1x16x16xf32, #tpu.memory_space<vmem>>, vector<1x16x16xf32>
    %c0_2 = arith.constant 0 : index
    %c0_3 = arith.constant 0 : index
    %c0_4 = arith.constant 0 : index
    %1 = vector.load %arg4[%c0_2, %c0_3, %c0_4] : memref<1x16x16xf32, #tpu.memory_space<vmem>>, vector<1x16x16xf32>
    %2 = arith.subf %0, %1 : vector<1x16x16xf32>
    %3 = vector.shape_cast %2 : vector<1x16x16xf32> to vector<16x16xf32>
    %4 = arith.truncf %3 : vector<16x16xf32> to vector<16x16xbf16>
    %c0_5 = arith.constant 0 : index
    %c0_6 = arith.constant 0 : index
    %5 = vector.load %arg1[%c0_5, %c0_6] : memref<16x32xbf16, #tpu.memory_space<vmem>>, vector<16x32xbf16>
    %cst = arith.constant dense<0.000000e+00> : vector<16x32xf32>
    %6 = tpu.matmul %4, %5, %cst {dimension_numbers = #tpu.dot_dimension_numbers<[1], [0], [0], [1], [0, 0, 1, 1], [], []>} : vector<16x16xbf16>, vector<16x32xbf16>, vector<16x32xf32> -> vector<16x32xf32>
    %7 = vector.shape_cast %6 : vector<16x32xf32> to vector<1x16x32xf32>
    %8 = vector.extract_strided_slice %7 {offsets = [0, 0, 0], sizes = [1, 16, 16], strides = [1, 1, 1]} : vector<1x16x32xf32> to vector<1x16x16xf32>
    %9 = tpu.transpose %8, [0, 2, 1] : vector<1x16x16xf32> -> vector<1x16x16xf32>
    %10 = vector.extract_strided_slice %7 {offsets = [0, 0, 16], sizes = [1, 16, 16], strides = [1, 1, 1]} : vector<1x16x32xf32> to vector<1x16x16xf32>
    %11 = tpu.transpose %10, [0, 2, 1] : vector<1x16x16xf32> -> vector<1x16x16xf32>
    %12 = tpu.concatenate %9, %11 in 2 : vector<1x16x16xf32>, vector<1x16x16xf32> -> vector<1x16x32xf32>
    %13 = vector.shape_cast %12 : vector<1x16x32xf32> to vector<16x32xf32>
    %14 = arith.truncf %13 : vector<16x32xf32> to vector<16x32xbf16>
    %c0_7 = arith.constant 0 : index
    %c0_8 = arith.constant 0 : index
    %15 = vector.load %arg2[%c0_7, %c0_8] : memref<32x32xbf16, #tpu.memory_space<vmem>>, vector<32x32xbf16>
    %cst_9 = arith.constant dense<0.000000e+00> : vector<16x32xf32>
    %16 = tpu.matmul %14, %15, %cst_9 {dimension_numbers = #tpu.dot_dimension_numbers<[1], [0], [0], [1], [0, 0, 1, 1], [], []>} : vector<16x32xbf16>, vector<32x32xbf16>, vector<16x32xf32> -> vector<16x32xf32>
    %17 = vector.shape_cast %16 : vector<16x32xf32> to vector<1x16x32xf32>
    %18 = vector.extract_strided_slice %17 {offsets = [0, 0, 0], sizes = [1, 16, 16], strides = [1, 1, 1]} : vector<1x16x32xf32> to vector<1x16x16xf32>
    %19 = vector.extract_strided_slice %17 {offsets = [0, 0, 16], sizes = [1, 16, 16], strides = [1, 1, 1]} : vector<1x16x32xf32> to vector<1x16x16xf32>
    %20 = arith.mulf %18, %18 : vector<1x16x16xf32>
    %21 = arith.mulf %19, %19 : vector<1x16x16xf32>
    %22 = arith.addf %20, %21 : vector<1x16x16xf32>
    %23 = math.sqrt %22 : vector<1x16x16xf32>
    %cst_10 = arith.constant dense<0xFF800000> : vector<1xf32>
    %24 = vector.multi_reduction <maximumf>, %23, %cst_10 [1, 2] : vector<1x16x16xf32> to vector<1xf32>
    %25 = vector.shape_cast %24 : vector<1xf32> to vector<1x1x1xf32>
    %cst_11 = arith.constant 0.000000e+00 : f32
    %26 = vector.broadcast %cst_11 : f32 to vector<1x1x1xf32>
    %27 = arith.cmpf ogt, %25, %26 : vector<1x1x1xf32>
    %cst_12 = arith.constant 1.000000e-30 : f32
    %28 = vector.broadcast %cst_12 : f32 to vector<1x1x1xf32>
    %29 = arith.maximumf %25, %28 : vector<1x1x1xf32>
    %cst_13 = arith.constant 1.000000e+00 : f32
    %30 = vector.broadcast %cst_13 : f32 to vector<1x1x1xf32>
    %31 = arith.divf %30, %29 : vector<1x1x1xf32>
    %cst_14 = arith.constant 0.000000e+00 : f32
    %32 = vector.broadcast %cst_14 : f32 to vector<1x1x1xf32>
    %33 = arith.select %27, %31, %32 : vector<1x1x1xi1>, vector<1x1x1xf32>
    %34 = vector.broadcast %33 : vector<1x1x1xf32> to vector<1x16x16xf32>
    %35 = arith.mulf %23, %34 : vector<1x16x16xf32>
    %cst_15 = arith.constant 0.000000e+00 : f32
    %cst_16 = arith.constant 1.000000e+00 : f32
    %36 = vector.broadcast %cst_15 : f32 to vector<1x16x16xf32>
    %37 = arith.maximumf %36, %35 : vector<1x16x16xf32>
    %38 = vector.broadcast %cst_16 : f32 to vector<1x16x16xf32>
    %39 = arith.minimumf %38, %37 : vector<1x16x16xf32>
    %40 = arith.mulf %39, %22 : vector<1x16x16xf32>
    %41 = vector.shape_cast %40 : vector<1x16x16xf32> to vector<1x1x16x16xf32>
    %cst_17 = arith.constant dense<0.000000e+00> : vector<1xf32>
    %42 = vector.multi_reduction <add>, %41, %cst_17 [1, 2, 3] : vector<1x1x16x16xf32> to vector<1xf32>
    %43 = vector.shape_cast %42 : vector<1xf32> to vector<1x1x1x1xf32>
    %44 = vector.extract %43[0, 0, 0, 0] : f32 from vector<1x1x1x1xf32>
    %cst_18 = arith.constant 4.8828125E-4 : f32
    %45 = arith.mulf %44, %cst_18 : f32
    %46 = vector.broadcast %45 : f32 to vector<1x8x128xf32>
    %c0_19 = arith.constant 0 : index
    %c0_20 = arith.constant 0 : index
    %c0_21 = arith.constant 0 : index
    %47 = vector.load %arg5[%c0_19, %c0_20, %c0_21] : memref<1x8x128xf32, #tpu.memory_space<vmem>>, vector<1x8x128xf32>
    tpu.vector_store %arg5[%c0_19, %c0_20, %c0_21], %46 {strides = array<i32>} : memref<1x8x128xf32, #tpu.memory_space<vmem>>, vector<1x8x128xf32>,
    return
  }
  func.func @transform_0(%arg0: i32) -> (i32, i32) {
    %c0_i32 = arith.constant 0 : i32
    %c0_i32_0 = arith.constant 0 : i32
    %c0_i32_1 = arith.constant 0 : i32
    return %c0_i32, %c0_i32_0 : i32, i32
  }
  func.func @transform_1(%arg0: i32) -> (i32, i32) {
    %c0_i32 = arith.constant 0 : i32
    %c0_i32_0 = arith.constant 0 : i32
    %c0_i32_1 = arith.constant 0 : i32
    return %c0_i32, %c0_i32_0 : i32, i32
  }
  func.func @transform_2(%arg0: i32) -> (i32, i32, i32) {
    %c0_i32 = arith.constant 0 : i32
    %c0_i32_0 = arith.constant 0 : i32
    %c0_i32_1 = arith.constant 0 : i32
    return %arg0, %c0_i32, %c0_i32_0 : i32, i32, i32
  }
  func.func @transform_3(%arg0: i32) -> (i32, i32, i32) {
    %c0_i32 = arith.constant 0 : i32
    %c0_i32_0 = arith.constant 0 : i32
    %c0_i32_1 = arith.constant 0 : i32
    return %arg0, %c0_i32, %c0_i32_0 : i32, i32, i32
  }
  func.func @transform_4(%arg0: i32) -> (i32, i32, i32) {
    %c0_i32 = arith.constant 0 : i32
    %c0_i32_0 = arith.constant 0 : i32
    %c0_i32_1 = arith.constant 0 : i32
    return %arg0, %c0_i32, %c0_i32_0 : i32, i32, i32
  }
}

</mosaic_0001>

<bundles_post_ra>
// kernel: tpu_custom_call.1
= control target key start
LH: loop header
LB: loop body
LE: loop exit
PB: predicated region body
PF: predicated region fallthrough
CT: control target
= control target key end

     0   :  { %9 = vsyncpa [#allocation3], 0  ;;  %s1287_s0 = inlined_call_operand.hbm [shape: bf16[16,32], index: 0, kind: input, shape index: {}]   ;;  %s1288_s1 = inlined_call_operand.hbm [shape: bf16[32,32], index: 1, kind: input, shape index: {}]   ;;  %s1289_s2 = inlined_call_operand.hbm [shape: f32[8,16,16], index: 2, kind: input, shape index: {}]   ;;  %s1290_s3 = inlined_call_operand.hbm [shape: f32[8,16,16], index: 3, kind: input, shape index: {}]   ;;  %s1291_s4 = inlined_call_operand.hbm [shape: f32[8,8,128], index: 4, kind: output, shape index: {}]  }
   0x1   :  { %10 = vsyncpa [#allocation6], 0 }
   0x2   :  { %11 = vsyncpa [#allocation4], 0 }
   0x3   :  { %13 = vsyncpa [#allocation4 + $0x1], 0  ;;  %s1036_s15 = smov 0   ;;  %s1038_s16 = smov 0  }
   0x4   :  { %s1040_s17 = smov 0   ;;  %s1042_s18 = smov 0  }
   0x5 LB: > { %s1057_s19 = sadd.s32 4294967295, %s996_s18   ;;  %s673_s20 = sadd.s32 4294967294, %s996_s18   ;;  %s996_s18 = sphi %s1042_s18, %s1324_s18   ;;  %s992_s17 = sphi %s1040_s17, %s1323_s17   ;;  %s988_s16 = sphi %s1038_s16, %s1322_s16   ;;  %s984_s15 = sphi %s1036_s15, %s1321_s15  }
   0x6   : > { %s1061_s21 = sadd.s32 1, %s996_s18   ;;  %s68_s22 = sadd.s32 1, %s992_s17 }
   0x7   : > { %s65_s23 = ssub.s32 %s996_s18, %s1061_s21  ;;  %p75_p0 = scmp.ne.s32.totalorder %s992_s17, %s988_s16 }
   0x8   : > { %p66_p1 = scmp.eq.s32.totalorder %s65_s23, 0  ;;  %p76_p2 = scmp.eq.s32.totalorder %s996_s18, 0 }
   0x9   : > { %p81_p3 = scmp.ne.s32.totalorder %s988_s16, %s984_s15  ;;  %p1296_p4 = scmp.eq.s32.totalorder %s1057_s19, 0 }
   0xa   : > { %s1073_s24 = scalar_select %p66_p1, %s992_s17, %s68_s22  }
   0xb   : > { %p1075_p5 = por %p76_p2, %p75_p0  ;;  %p1081_p6 = por %p1296_p4, %p81_p3 }
   0xc   : > { %p131_p7 = scmp.eq.s32.totalorder %s1057_s19, 7  ;;  %p137_p8 = scmp.eq.s32.totalorder %s673_s20, 7 }
   0xd   : > { %s1302_s26 = scalar_select %p1081_p6, 1, 0 }
   0xe   : > { %p674_p9 = scmp.ge.s32.totalorder %s996_s18, 1  ;;  %p144_p10 = scmp.lt.s32.totalorder %s996_s18, 9 }
   0xf   : > { %p1088_p11 = por %p131_p7, %p75_p0  ;;  %p1092_p12 = por %p137_p8, %p81_p3 }
  0x10   : > { %p1096_p13 = pnand %p674_p9, %p144_p10  ;;  %s998_s30 = smov [#allocation2]  }
  0x11   : > { %s1303_s27 = scalar_select %p1088_p11, 1, 0 }
  0x12   : > { %s1304_s28 = scalar_select %p1092_p12, 1, 0 }
  0x13   : > { %s1305_s29 = scalar_select %p1096_p13, 1, 0 }
  0x14   : > { %p736_p1 = pneg %p1096_p13  ;;  %s156_s5 = sshll.u32 %s998_s30, 4  ;;  %s157_s5 = int_to_ptr.vmem [resolvable:$true] %s156_s5 }
  0x15   : > { %p756_p0 = scmp.lt.s32.totalorder %s996_s18, 8  ;;  %s183_s7 = sand.u32 1, %s996_s18  }
  0x16   : > { %p1104_p2 = pnand %p736_p1, %p1296_p4  ;;  %s827_s8 = scalar_lea.vmem %s157_s5, 128 }
  0x17   : > { %p828_p7 = scmp.ne.s32.totalorder %s157_s5, %s827_s8  ;;  %p835_p10 = scmp.lt.s32.totalorder %s157_s5, %s157_s5 }
  0x18   : > { %p1297_p3 = pneg %p1104_p2  ;;  %p836_p12 = scmp.lt.s32.totalorder %s827_s8, %s827_s8 }
  0x1a   : > { %p830_p8 = pnand %p828_p7, %p1297_p3  ;;  %p837_p11 = por %p836_p12, %p835_p10 }
  0x1c   : > { %p831_p9 = pneg %p830_p8 }
  0x1e   : > { %p838_p6 = pnand %p837_p11, %p831_p9 }
  0x20   : > { %841 = shalt.err (!%p838_p6)
}
  0x21   : > { %s1294_s9 = smov 64   ;;  %s1295_s10 = smov 4  }
  0x22   : > { %739 = dma.hbm_to_vmem [thread:$0]  (!%p1104_p2), %s1287_s0, 128, %s157_s5, [#allocation3], %s1294_s9, %s1294_s9, %s1295_s10  }
  0x23   : > { %p1127_p11 = pnand %p756_p0, %p1075_p5  ;;  %s185_s14 = sand.u32 1, %s992_s17  }
  0x24   : > { %s1132_s20 = sshll.u32 %s185_s14, 4  ;;  %s699_s22 = sshll.u32 %s996_s18, 8 }
  0x25   : > { %s1140_s8 = scalar_lea.hbm %s1289_s2, %s699_s22  ;;  %s187_s25 = scalar_lea.vmem [#allocation7], %s1132_s20 }
  0x26   : > { %s194_s5 = sshll.u32 %s187_s25, 4  ;;  %s1145_s11 = scalar_lea.sflag [#allocation3], %s183_s7  ;;  %s1143_s5 = int_to_ptr.vmem [resolvable:$true] %s194_s5 }
  0x27   : > { %s842_s12 = scalar_lea.hbm %s1140_s8, 256  ;;  %p844_p6 = pneg %p1127_p11 }
  0x28   : > { %p843_p5 = scmp.ne.s32.totalorder %s1140_s8, %s842_s12  ;;  %s847_s30 = scalar_lea.hbm %s1289_s2, 2048 }
  0x29   : > { %p848_p0 = scmp.lt.s32.totalorder %s1140_s8, %s1289_s2  ;;  %p849_p7 = scmp.lt.s32.totalorder %s847_s30, %s842_s12 }
  0x2a   : > { %p845_p12 = pnand %p844_p6, %p843_p5 }
  0x2b   : > { %p850_p8 = por %p849_p7, %p848_p0 }
  0x2c   : > { %p846_p1 = pneg %p845_p12 }
  0x2e   : > { %p851_p9 = pnand %p850_p8, %p846_p1 }
  0x30   : > { %854 = shalt.err (!%p851_p9)
}
  0x31   : > { %s855_s7 = scalar_lea.vmem %s1143_s5, 256  ;;  %s1001_s25 = smov [#allocation7]  }
  0x32   : > { %p856_p10 = scmp.ne.s32.totalorder %s1143_s5, %s855_s7  ;;  %s860_s14 = sshll.u32 %s1001_s25, 4  ;;  %s861_s14 = int_to_ptr.vmem [resolvable:$false] %s860_s14 }
  0x33   : > { %s862_s23 = scalar_lea.vmem %s861_s14, 512  ;;  %p863_p4 = scmp.lt.s32.totalorder %s1143_s5, %s861_s14 }
  0x34   : > { %p858_p5 = pnand %p856_p10, %p844_p6  ;;  %p864_p3 = scmp.lt.s32.totalorder %s862_s23, %s855_s7 }
  0x36   : > { %p859_p12 = pneg %p858_p5  ;;  %p865_p13 = por %p864_p3, %p863_p4 }
  0x38   : > { %p866_p0 = pnand %p865_p13, %p859_p12 }
  0x3a   : > { %869 = shalt.err (!%p866_p0)
}
  0x3b   : > { %s1299_s9 = smov 128   ;;  %s1300_s10 = smov 8  }
  0x3c   : > { %746 = dma.hbm_to_vmem [thread:$0]  (!%p1127_p11), %s1140_s8, 256, %s1143_s5, %s1145_s11, %s1299_s9, %s1299_s9, %s1300_s10  }
  0x3d   : > { %s1004_s12 = smov [#allocation5]   ;;  %s1180_s14 = scalar_lea.hbm %s1290_s3, %s699_s22 }
  0x3e   : > { %s169_s30 = sshll.u32 %s1004_s12, 4  ;;  %p1308_p13 = pneg %p1104_p2  ;;  %s170_s30 = int_to_ptr.vmem [resolvable:$true] %s169_s30 }
  0x3f   : > { %s881_s23 = scalar_lea.vmem %s170_s30, 256  ;;  %p889_p7 = scmp.lt.s32.totalorder %s170_s30, %s170_s30 }
  0x40   : > { %p882_p4 = scmp.ne.s32.totalorder %s170_s30, %s881_s23  ;;  %p890_p8 = scmp.lt.s32.totalorder %s881_s23, %s881_s23 }
  0x42   : > { %p884_p3 = pnand %p882_p4, %p1308_p13  ;;  %p891_p9 = por %p890_p8, %p889_p7 }
  0x44   : > { %p885_p1 = pneg %p884_p3 }
  0x46   : > { %p892_p10 = pnand %p891_p9, %p885_p1 }
  0x48   : > { %895 = shalt.err (!%p892_p10)
}
  0x49   : > { %s1309_s8 = smov 4   ;;  %s1310_s5 = smov 64  }
  0x4a   : > { %742 = dma.hbm_to_vmem [thread:$0]  (!%p1104_p2), %s1288_s1, 256, %s170_s30, [#allocation6], %s1310_s5, %s1310_s5, %s1309_s8  }
  0x4b   : > { %s208_s22 = scalar_lea.vmem [#allocation8], %s1132_s20  ;;  %s896_s23 = scalar_lea.hbm %s1180_s14, 256 }
  0x4c   : > { %s215_s25 = sshll.u32 %s208_s22, 4  ;;  %p897_p5 = scmp.ne.s32.totalorder %s1180_s14, %s896_s23  ;;  %s216_s25 = int_to_ptr.vmem [resolvable:$true] %s215_s25 }
  0x4d   : > { %s901_s10 = scalar_lea.hbm %s1290_s3, 2048  ;;  %p902_p4 = scmp.lt.s32.totalorder %s1180_s14, %s1290_s3 }
  0x4e   : > { %p899_p12 = pnand %p897_p5, %p844_p6  ;;  %p903_p13 = scmp.lt.s32.totalorder %s901_s10, %s896_s23 }
  0x50   : > { %p900_p0 = pneg %p899_p12  ;;  %p904_p3 = por %p903_p13, %p902_p4 }
  0x52   : > { %p905_p2 = pnand %p904_p3, %p900_p0 }
  0x54   : > { %908 = shalt.err (!%p905_p2)
}
  0x55   : > { %s909_s20 = scalar_lea.vmem %s216_s25, 256  ;;  %s1005_s30 = smov [#allocation8]  }
  0x56   : > { %p910_p1 = scmp.ne.s32.totalorder %s216_s25, %s909_s20  ;;  %s914_s8 = sshll.u32 %s1005_s30, 4  ;;  %s915_s8 = int_to_ptr.vmem [resolvable:$false] %s914_s8 }
  0x57   : > { %s916_s9 = scalar_lea.vmem %s915_s8, 512  ;;  %p917_p9 = scmp.lt.s32.totalorder %s216_s25, %s915_s8 }
  0x58   : > { %p912_p7 = pnand %p910_p1, %p844_p6  ;;  %p918_p10 = scmp.lt.s32.totalorder %s916_s9, %s909_s20 }
  0x5a   : > { %p913_p8 = pneg %p912_p7  ;;  %p919_p5 = por %p918_p10, %p917_p9 }
  0x5c   : > { %p920_p12 = pnand %p919_p5, %p913_p8 }
  0x5e   : > { %923 = shalt.err (!%p920_p12)
}
  0x5f   : > { %s1311_s10 = smov 8   ;;  %s1312_s5 = smov 128  }
  0x60   : > { %749 = dma.hbm_to_vmem [thread:$0]  (!%p1127_p11), %s1180_s14, 256, %s216_s25, %s1145_s11, %s1312_s5, %s1312_s5, %s1311_s10  }
  0x61   : > { %p1313_p6 = scmp.ne.s32.totalorder %s1305_s29, 0 }
  0x62   : > { %p1314_p0 = scmp.eq.s32.totalorder (!%p1313_p6), %s1057_s19, 0 }
  0x63   : > { %227 = sbr.rel (%p1313_p6) target bundleno = 1410 (0x582), region = 36 }
  0x68   : > { %967 = dma.done.wait (%p1314_p0), [#allocation3], 128   ;;  %p1315_p4 = pmov %p1314_p0 }
  0x69   : > { %p1316_p13 = pmov %p1314_p0 }
  0x6a   : > { %969 = vsyncadd (%p1315_p4), [#allocation3], 4294967168 }
  0x6b   : > { %971 = dma.done.wait (%p1316_p13), [#allocation6], 256   ;;  %p1317_p3 = pmov %p1314_p0 }
  0x6c   : > { %s237_s13 = sand.u32 1, %s1057_s19   ;;  %s1228_s11 = sand.u32 1, %s988_s16  }
  0x6d   : > { %973 = vsyncadd (%p1317_p3), [#allocation6], 4294967040  ;;  %s687_s29 = sshll.u32 %s1228_s11, 4  ;;  %s238_s14 = scalar_lea.sflag [#allocation3], %s237_s13 }
  0x6e   : > { %s241_s22 = scalar_lea.vmem [#allocation7], %s687_s29  ;;  %p1318_p11 = scmp.ne.s32.totalorder %s1302_s26, 0 }
  0x70   : > { %975 = dma.done.wait (%p1318_p11), %s238_s14, 512  }
  0x71   : > { %977 = vsyncadd (%p1318_p11), %s238_s14, 4294966784  ;;  %v1006_v0 = vmov 0.0   ;;  %vm1007_vm0 = vmmov 0   ;;  %v807_v1 = vld [vmem:[#allocation2] sm:$0xff]   ;;  %v281_v2 = vld [vmem:[%s241_s22] sm:$0xff]  ;;  %s250_s25 = scalar_lea.vmem [#allocation8], %s687_s29 }
  0x72   : > { %706 = vmatprep.subr.bf16.mxu0 %v1006_v0  ;;  %708 = vmatprep.mubr.msk.bf16.mxu0 %vm1007_vm0, %v1006_v0  ;;  %v282_v3 = vld [vmem:[%s241_s22 + $0x8] sm:$0xff]  ;;  %v283_v4 = vld [vmem:[%s250_s25] sm:$0xff]  ;;  %vm296_vm1 = vcmask 130048   ;;  %s1008_s26 = smov 112   ;;  %s1009_s23 = smov 16   ;;  %vm440_vm2 = vcmask 261120  }
  0x73   : > { %712 = vmatprep.subr.bf16.mxu1 %v1006_v0  ;;  %716 = vmatprep.mubr.msk.bf16.mxu1 %vm1007_vm0, %v1006_v0  ;;  %v284_v5 = vld [vmem:[%s250_s25 + $0x8] sm:$0xff]  ;;  %v285_v6 = vsub.f32 %v281_v2, %v283_v4  ;;  %v809_v16 = vld [vmem:[#allocation5] sm:$0xff]   ;;  %s689_s6 = sshll.u32 %s1228_s11, 3  ;;  %s696_s20 = sshll.u32 %s1057_s19, 7 }
  0x74   : > { %707 = vmatpush3.bf16.msra.mxu0 %v807_v1  ;;  %v286_v7 = vsub.f32 %v282_v3, %v284_v5  ;;  %v808_v15 = vld [vmem:[#allocation5 + $0x8] sm:$0xff]   ;;  %s279_s12 = scalar_lea.vmem [#allocation9], %s689_s6  ;;  %s1251_s5 = scalar_lea.hbm %s1291_s4, %s696_s20 }
  0x75   : > { %713 = vmatpush3.bf16.msra.mxu1 %v808_v15  ;;  %s564_s7 = sshll.u32 %s279_s12, 4  ;;  %s551_s13 = scalar_lea.sflag [#allocation4], %s1228_s11  ;;  %s565_s7 = int_to_ptr.vmem [resolvable:$true] %s564_s7 }
  0x76   : > { %v287_v8 = vpack.c.bf16 %v286_v7, %v285_v6  ;;  %714 = vmatprep.subr.bf16.mxu1 %v1006_v0  ;;  %s924_s29 = scalar_lea.vmem %s565_s7, 128  ;;  %p1319_p1 = scmp.ne.s32.totalorder %s1303_s27, 0 }
  0x77   : > { %p925_p2 = scmp.ne.s32.totalorder %s565_s7, %s924_s29  ;;  %s1010_s14 = smov [#allocation9]  }
  0x78   : > { %709 = vmatmul.mubr.msk.bf16.vlgmr.msra.gmra.mxu0 %vm296_vm1, %v287_v8  ;;  %s928_s22 = sshll.u32 %s1010_s14, 4  ;;  %s929_s22 = int_to_ptr.vmem [resolvable:$false] %s928_s22 }
  0x79   : > { %715 = vmatpush3.bf16.msra.mxu1 %v809_v16  ;;  %p926_p7 = pnand %p925_p2, %p1319_p1  ;;  %s930_s19 = scalar_lea.vmem %s929_s22, 256 }
  0x7a   : > { %p931_p9 = scmp.lt.s32.totalorder %s565_s7, %s929_s22  ;;  %p932_p10 = scmp.lt.s32.totalorder %s930_s19, %s924_s29 }
  0x7b   : > { %p927_p8 = pneg %p926_p7 }
  0x7c   : > { %p933_p5 = por %p932_p10, %p931_p9 }
  0x7e   : > { %p934_p12 = pnand %p933_p5, %p927_p8 }
 0x138   : > { %v334_v9 = vpop.f32.mrf.mxu0 }
 0x139   : > { %375 = vrot.lane.b32.xlu0 %v334_v9, %s1008_s26 }
 0x13a   : > { %v710_v10 = vpop.f32.mrf.mxu0 }
 0x13c   : > { %v337_v11 = vpop.f32.mrf.mxu0 }
 0x13d   : > { %377 = vrot.lane.b32.xlu0 %v337_v11, %s1008_s26 }
 0x13e   : > { %v711_v12 = vpop.f32.mrf.mxu0 }
 0x1ab   : > { %v376_v13 = vpop.permute.xlu0 %375 }
 0x1ac   : > { %381 = vxpose.xlu1.b32.start [1/2] (short) (narrow) %v376_v13, 16 }
 0x1af   : > { %v378_v14 = vpop.permute.xlu0 %377 }
 0x1b0   : > { %382 = vxpose.xlu1.b32.end [2/2] (short) (narrow) %v378_v14, 16 }
 0x1b4   : > { %341 = vxpose.xlu1.b32.start [1/2] (short) (narrow) %v334_v9, 16 }
 0x1b8   : > { %342 = vxpose.xlu1.b32.end [2/2] (short) (narrow) %v337_v11, 16 }
 0x228   : > { %v397_v17 = vpop.trf.xlu1 }
 0x22c   : > { %v398_v18 = vpop.trf.xlu1 }
 0x22d   : > { %v802_v19 = vpack.i.bf16 %v398_v18, %v397_v17 }
 0x22f   : > { %803 = vrot.lane.b32.xlu0 %v802_v19, %s1009_s23 }
 0x230   : > { %v357_v20 = vpop.trf.xlu1 }
 0x234   : > { %v358_v22 = vpop.trf.xlu1 }
 0x2a1   : > { %v804_v21 = vpop.permute.xlu0 %803 }
 0x2a2   : > { %v806_v23 = vunpack.i.h.bf16 %v804_v21  ;;  %v805_v24 = vunpack.i.l.bf16 %v804_v21 }
 0x2a4   : > { %v421_v25 = vsel %vm296_vm1, %v357_v20, %v805_v24  ;;  %v422_v26 = vsel %vm296_vm1, %v358_v22, %v806_v23 }
 0x2a5   : > { %v423_v27 = vpack.c.bf16 %v422_v26, %v421_v25 }
 0x2a7   : > { %717 = vmatmul.mubr.msk.bf16.vlgmr.msra.gmra.mxu1 %vm440_vm2, %v423_v27 }
 0x367   : > { %v478_v28 = vpop.f32.mrf.mxu1 }
 0x368   : > { %v485_v29 = vmul.f32 %v478_v28, %v478_v28 }
 0x369   : > { %v718_v30 = vpop.f32.mrf.mxu1 }
 0x36a   : > { %489 = vrot.lane.b32.xlu0 %v485_v29, %s1008_s26 }
 0x36b   : > { %v481_v31 = vpop.f32.mrf.mxu1 }
 0x36c   : > { %v486_v32 = vmul.f32 %v481_v31, %v481_v31 }
 0x36d   : > { %v719_v33 = vpop.f32.mrf.mxu1 }
 0x36e   : > { %491 = vrot.lane.b32.xlu0 %v486_v32, %s1008_s26 }
 0x3dc   : > { %v490_v34 = vpop.permute.xlu0 %489 }
 0x3dd   : > { %v495_v35 = vadd.f32 %v490_v34, %v485_v29 }
 0x3df   : > { %810 = vrsqrt.f32 %v495_v35  ;;  %vm499_vm3 = vcmp.eq.f32.partialorder %v495_v35, inf  ;;  %v502_v42 = vand.u32 2147483648, %v495_v35  ;;  %vm501_vm4 = vcmp.eq.f32.partialorder %v495_v35, 0.0 }
 0x3e0   : > { %v492_v36 = vpop.permute.xlu0 %491 }
 0x3e1   : > { %v496_v37 = vadd.f32 %v492_v36, %v486_v32 }
 0x3e3   : > { %812 = vrsqrt.f32 %v496_v37  ;;  %vm506_vm5 = vcmp.eq.f32.partialorder %v496_v37, inf  ;;  %v509_v45 = vand.u32 2147483648, %v496_v37  ;;  %vm508_vm6 = vcmp.eq.f32.partialorder %v496_v37, 0.0 }
 0x3ec   : > { %v811_v38 = vpop.eup %810 }
 0x3ed   : > { %v498_v39 = vmul.f32 %v811_v38, %v495_v35 }
 0x3ef   : > { %v500_v40 = vsel %vm499_vm3, %v495_v35, %v498_v39 }
 0x3f0   : > { %v813_v41 = vpop.eup %812  ;;  %v503_v44 = vsel %vm501_vm4, %v502_v42, %v500_v40 }
 0x3f1   : > { %v505_v43 = vmul.f32 %v813_v41, %v496_v37  ;;  %v511_v48 = vsel %vm296_vm1, %v503_v44, -inf }
 0x3f3   : > { %v507_v46 = vsel %vm506_vm5, %v496_v37, %v505_v43 }
 0x3f4   : > { %v510_v47 = vsel %vm508_vm6, %v509_v45, %v507_v46 }
 0x3f5   : > { %v512_v49 = vsel %vm296_vm1, %v510_v47, -inf }
 0x3f6   : > { %v513_v50 = vmax.f32 %v511_v48, %v512_v49 }
 0x3f8   : > { %514 = vmax.xlane.f32.xlu1 %v513_v50 }
 0x481   : > { %v515_v51 = vpop.xlane.xlu1 %514 }
 0x482   : > { %v516_v52 = vrot.slane %v515_v51, 4 }
 0x484   : > { %v517_v53 = vmax.f32 %v515_v51, %v516_v52 }
 0x486   : > { %v518_v54 = vrot.slane %v517_v53, 2 }
 0x488   : > { %v519_v55 = vmax.f32 %v517_v53, %v518_v54 }
 0x48a   : > { %v520_v56 = vrot.slane %v519_v55, 1 }
 0x48c   : > { %v521_v57 = vmax.f32 %v519_v55, %v520_v56 }
 0x48e   : > { %v523_v58 = vmax.f32 %v521_v57, 1e-30  ;;  %vm522_vm7 = vcmp.gt.f32.partialorder %v521_v57, 0.0 }
 0x490   : > { %814 = vrcp.f32 %v523_v58 }
 0x49d   : > { %v815_v59 = vpop.eup %814 }
 0x49e   : > { %v526_v60 = vsel %vm522_vm7, %v815_v59, 0.0 }
 0x49f   : > { %v527_v61 = vmul.f32 %v526_v60, %v503_v44  ;;  %v528_v62 = vmul.f32 %v526_v60, %v510_v47 }
 0x4a1   : > { %v529_v63 = vmax.f32 %v527_v61, 0.0  ;;  %v530_v0 = vmax.f32 %v528_v62, 0.0 }
 0x4a3   : > { %v531_v1 = vmin.f32 %v529_v63, 1.0  ;;  %v532_v2 = vmin.f32 %v530_v0, 1.0 }
 0x4a5   : > { %v533_v3 = vmul.f32 %v531_v1, %v495_v35  ;;  %v534_v4 = vmul.f32 %v532_v2, %v496_v37 }
 0x4a7   : > { %v535_v5 = vsel %vm296_vm1, %v533_v3, 0.0  ;;  %v536_v6 = vsel %vm296_vm1, %v534_v4, 0.0 }
 0x4a8   : > { %v537_v7 = vadd.f32 %v536_v6, %v535_v5 }
 0x4aa   : > { %538 = vadd.xlane.f32.xlu0 %v537_v7 }
 0x533   : > { %v539_v8 = vpop.xlane.xlu0 %538 }
 0x534   : > { %v540_v9 = vrot.slane %v539_v8, 4 }
 0x536   : > { %v541_v10 = vadd.f32 %v540_v9, %v539_v8 }
 0x538   : > { %v542_v11 = vrot.slane %v541_v10, 2 }
 0x53a   : > { %v543_v12 = vadd.f32 %v542_v11, %v541_v10 }
 0x53c   : > { %v544_v13 = vrot.slane %v543_v12, 1 }
 0x53e   : > { %v545_v14 = vadd.f32 %v544_v13, %v543_v12 }
 0x540   : > { %720 = vpush %v545_v14 }
 0x571   : > { %s721_s30 = spop %720 }
 0x572   : > { %s547_s8 = smul.f32 0.00048828125, %s721_s30 }
 0x574   : > { %v548_v15 = vstv %s547_s8 }
 0x575   : > { %549 = vst [vmem:[%s279_s12] sm:$0xff] %v548_v15 }
 0x576   : > { %937 = shalt.err (!%p934_p12)
}
 0x577   : > { %s938_s25 = scalar_lea.hbm %s1251_s5, 128  ;;  %s942_s23 = scalar_lea.hbm %s1291_s4, 1024 }
 0x578   : > { %p939_p6 = scmp.ne.s32.totalorder %s1251_s5, %s938_s25  ;;  %p943_p13 = scmp.lt.s32.totalorder %s1251_s5, %s1291_s4 }
 0x579   : > { %p944_p3 = scmp.lt.s32.totalorder %s942_s23, %s938_s25 }
 0x57a   : > { %p940_p0 = pnand %p939_p6, %p1319_p1 }
 0x57b   : > { %p945_p11 = por %p944_p3, %p943_p13 }
 0x57c   : > { %p941_p4 = pneg %p940_p0 }
 0x57e   : > { %p946_p2 = pnand %p945_p11, %p941_p4 }
 0x580   : > { %949 = shalt.err (!%p946_p2)
}
 0x581   : > { %734 = dma.vmem_to_hbm [thread:$0]  (%p1319_p1), %s565_s7, 128, %s1251_s5, %s551_s13  }
 0x582 PF: > { %p759_p7 = scmp.ge.s32.totalorder %s996_s18, 2  ;;  %s576_s20 = sand.u32 1, %s984_s15  }
 0x583   : > { %p1320_p8 = scmp.ne.s32.totalorder %s1304_s28, 0  ;;  %s577_s30 = scalar_lea.sflag [#allocation4], %s576_s20 }
 0x585   : > { %p751_p9 = pnand %p759_p7, %p1320_p8 }
 0x587   : > { %p752_p10 = pneg %p751_p9 }
 0x589   : > { %979 = dma.done.wait (%p752_p10), %s577_s30, 128  }
 0x58a   : > { %981 = vsyncadd (%p752_p10), %s577_s30, 4294967168  ;;  %p16_p5 = scmp.ge.s32.totalorder %s1061_s21, 10   ;;  %s1321_s15 = smov %s988_s16 }
 0x58b   : > { %s1322_s16 = smov %s992_s17  ;;  %s1323_s17 = smov %s1073_s24 }
 0x58c   : > { %s1324_s18 = smov %s1061_s21  ;;  %18 = sbr.rel (!%p16_p5) target bundleno = 5 (0x5), region = 99 }
 0x591   :  { %582 = vsyncpa [#allocation3], 1 }
 0x592   :  { %584 = vsyncpa [#allocation3 + $0x1], 1 }
 0x593   :  { %585 = vsyncpa [#allocation6], 1 }
 0x594   :  { %586 = vsyncpa [#allocation4], 1 }
 0x595   :  { %588 = vsyncpa [#allocation4 + $0x1], 1 }

</bundles_post_ra>
